<compile_context>
chip_gen: v6e
topology: v6e:2x2x1
jax: 0.10.0
libtpu: 0.0.40
codegen_flags: <defaults>
</compile_context>

<pallas_src>
import jax
import jax.numpy as jnp
from jax import lax
from jax.experimental import pallas as pl
from jax.experimental.pallas import tpu as pltpu


def _measurement_kernel(p_ref, enc_ref, w1_ref, b1_ref, w2_ref, b2_ref, out_ref):
    # p_ref:   (Bt, Nt, P)  particle tile (streamed bf16)
    # enc_ref: (Bt, D)      observation encodings (f32)
    # w1_ref:  (P, H), b1_ref: (1, H)
    # w2_ref:  (H, D), b2_ref: (1, D)
    # out_ref: (Bt, Nt)     log-likelihood per particle
    Bt, Nt, P = p_ref.shape
    D = enc_ref.shape[-1]

    # Flatten batch x particle rows so both Linear layers run as one big
    # (Bt*Nt, .) MXU matmul. Nt is a multiple of 8 (or full N) in practice so
    # this reshape stays a layout no-op; accumulate in f32.
    x = p_ref[...].astype(jnp.float32).reshape(Bt * Nt, P)

    h = jnp.dot(x, w1_ref[...], preferred_element_type=jnp.float32) + b1_ref[...]
    h = jnp.maximum(h, 0.0)                                             # (M, H)
    e_state = (jnp.dot(h, w2_ref[...], preferred_element_type=jnp.float32)
               + b2_ref[...])                                           # (M, D)
    e_state = e_state.reshape(Bt, Nt, D)

    # Cosine similarity without materializing normalized vectors:
    #   cos = <e_state, e_obs> * rsqrt(||e_state||^2) * rsqrt(||e_obs||^2)
    e_obs = enc_ref[...]                                                # (Bt, D)
    inv_obs = lax.rsqrt(
        jnp.sum(e_obs * e_obs, axis=-1, keepdims=True) + 1e-16)         # (Bt, 1)
    dot = jnp.sum(e_state * e_obs[:, None, :], axis=-1)                 # (Bt, Nt)
    inv_state = lax.rsqrt(jnp.sum(e_state * e_state, axis=-1) + 1e-16)  # (Bt, Nt)
    cos_sim = dot * inv_state * inv_obs                                 # (Bt, Nt)

    # Clamp: fp error can push cos_sim a hair above 1.0, which would make the
    # log argument non-positive (NaN/inf).
    dist = jnp.maximum(1.0 - cos_sim, 0.0)
    # log(1 / (1e-7 + dist)) == -log(1e-7 + dist)
    out_ref[...] = -jnp.log(1e-7 + dist)


def _vmem_budget_and_limit():
    """Generation-aware VMEM tile budget and scoped-VMEM compiler limit."""
    try:
        cap = int(pltpu.get_tpu_info().vmem_capacity_bytes)
    except Exception:
        cap = 64 << 20  # assume the smallest generation (v7x) if the query fails
    return int(cap * 0.70), int(cap * 0.85)


def _pick_tiles(B, N, P, H, D, vmem_budget_bytes):
    """Pick (Bt, Nt) tile sizes.

    Block-shape legality:
      * Bt (second-to-last dim of the (Bt, Nt) output / (Bt, D) enc blocks)
        must be a multiple of 8 or equal to B.  Never Bt in {2,4} for B > Bt.
      * Nt (lane dim of the output block) must be a multiple of 128 or == N.
    Objective: largest tiles that fit the per-step VMEM row budget, with >= 2
    batch grid steps when possible (v7x dual TensorCores).
    """
    bt_cands = sorted((d for d in range(8, B + 1, 8) if B % d == 0), reverse=True)
    if not bt_cands:
        bt_cands = [B]
    two_step = [d for d in bt_cands if B // d >= 2]
    Bt = two_step[0] if two_step else bt_cands[0]

    if N % 128 == 0:
        nt_cands = sorted((d for d in range(128, N + 1, 128) if N % d == 0),
                          reverse=True)
    else:
        nt_cands = [N]

    # Per-(batch,particle)-row VMEM cost at one grid step: double-buffered bf16
    # particle block + f32 h / e_state intermediates + double-buffered f32 out.
    row_bytes = 2 * (2 * P) + 4 * (H + 2 * D) + 2 * 4
    max_rows = max(8, vmem_budget_bytes // row_bytes)

    Nt = nt_cands[-1]
    for d in nt_cands:            # descending: largest Nt that fits
        if Bt * d <= max_rows:
            Nt = d
            break
    if Bt * Nt > max_rows:        # shrink Bt (stays a legal candidate)
        for d in bt_cands:        # descending
            if d * Nt <= max_rows:
                Bt = d
                break
    # TODO(synk): if Bt*Nt still exceeds the budget (huge N not divisible by
    # 128), fall back to Element-indexed N tiles; not needed at these shapes.
    return Bt, Nt


def measurement_model_cosine_distance(encodings, update_particles,
                                      w1, b1, w2, b2, *,
                                      batch_tile=None, particle_tile=None,
                                      stream_dtype=jnp.bfloat16):
    """encodings: (B, D), update_particles: (B, N, P) -> (B, N) f32 log-likelihood."""
    B, N, P = update_particles.shape
    D = encodings.shape[-1]
    H = w1.shape[-1]

    vmem_budget, vmem_limit = _vmem_budget_and_limit()
    Bt, Nt = _pick_tiles(B, N, P, H, D, vmem_budget)
    if batch_tile is not None:
        Bt = batch_tile
    if particle_tile is not None:
        Nt = particle_tile
    assert B % Bt == 0 and N % Nt == 0, "tiles must divide (B, N)"

    # Stream the dominant HBM input (particles) as bf16; everything else f32.
    particles = update_particles.astype(stream_dtype)
    encodings = encodings.astype(jnp.float32)
    w1f = w1.astype(jnp.float32)
    w2f = w2.astype(jnp.float32)
    b1_2d = b1.reshape(1, H).astype(jnp.float32)
    b2_2d = b2.reshape(1, D).astype(jnp.float32)

    grid_spec = pltpu.PrefetchScalarGridSpec(
        num_scalar_prefetch=0,
        grid=(B // Bt, N // Nt),
        in_specs=[
            pl.BlockSpec((Bt, Nt, P), lambda b, n: (b, n, 0)),   # particles (bf16)
            pl.BlockSpec((Bt, D), lambda b, n: (b, 0)),          # obs encodings
            pl.BlockSpec((P, H), lambda b, n: (0, 0)),           # W1
            pl.BlockSpec((1, H), lambda b, n: (0, 0)),           # b1
            pl.BlockSpec((H, D), lambda b, n: (0, 0)),           # W2
            pl.BlockSpec((1, D), lambda b, n: (0, 0)),           # b2
        ],
        out_specs=pl.BlockSpec((Bt, Nt), lambda b, n: (b, n)),
    )

    return pl.pallas_call(
        _measurement_kernel,
        out_shape=jax.ShapeDtypeStruct((B, N), jnp.float32),
        grid_spec=grid_spec,
        compiler_params=pltpu.CompilerParams(
            dimension_semantics=("parallel", "parallel"),
            vmem_limit_bytes=vmem_limit),
    )(particles, encodings, w1f, b1_2d, w2f, b2_2d)


def _reference(encodings, update_particles, w1, b1, w2, b2):
    # Pure-JAX reference mirroring the PyTorch module (f32-accurate matmuls).
    hp = lax.Precision.HIGHEST
    h = jnp.maximum(
        jnp.einsum('bnp,ph->bnh', update_particles, w1, precision=hp) + b1, 0.0)
    e_state = jnp.einsum('bnh,hd->bnd', h, w2, precision=hp) + b2
    e_obs = jnp.broadcast_to(encodings[:, None, :], e_state.shape)
    sn = e_state / (jnp.linalg.norm(e_state, axis=-1, keepdims=True) + 1e-8)
    on = e_obs / (jnp.linalg.norm(e_obs, axis=-1, keepdims=True) + 1e-8)
    dist = 1.0 - jnp.sum(sn * on, axis=-1)
    return jnp.log(1.0 / (1e-7 + dist))


if __name__ == "__main__":
    # Small shapes consistent with the module's forward:
    B, N, P = 2, 8, 4      # batch, particles, particle state dim
    H, D = 32, 32          # encoder hidden dim, encoding dim

    key = jax.random.PRNGKey(0)
    k_enc, k_part, k_w1, k_b1, k_w2, k_b2 = jax.random.split(key, 6)

    encodings = jax.random.normal(k_enc, (B, D), dtype=jnp.float32)
    update_particles = jax.random.normal(k_part, (B, N, P), dtype=jnp.float32)

    # Deterministic particle_encoder params (Linear(P,H) -> ReLU -> Linear(H,D))
    w1 = jax.random.normal(k_w1, (P, H), dtype=jnp.float32) * 0.1
    b1 = jax.random.normal(k_b1, (H,), dtype=jnp.float32) * 0.01
    w2 = jax.random.normal(k_w2, (H, D), dtype=jnp.float32) * 0.1
    b2 = jax.random.normal(k_b2, (D,), dtype=jnp.float32) * 0.01

    out = measurement_model_cosine_distance(
        encodings, update_particles, w1, b1, w2, b2)
    out = jax.block_until_ready(out)

    # Reference on the bf16-rounded particle stream (the kernel intentionally
    # streams particles as bf16 and accumulates in f32).
    parts_rounded = update_particles.astype(jnp.bfloat16).astype(jnp.float32)
    ref = _reference(encodings, parts_rounded, w1, b1, w2, b2)

    assert out.shape == (B, N)
    assert jnp.allclose(out, ref, atol=1e-4, rtol=1e-4), "mismatch vs reference"

    print("KERNEL_OK")
</pallas_src>

<mosaic_0001>
module attributes {stable_mosaic.version = 11 : i64} {
  func.func @_measurement_kernel(%arg0: i32, %arg1: i32, %arg2: memref<2x8x4xbf16, #tpu.memory_space<vmem>>, %arg3: memref<2x32xf32, #tpu.memory_space<vmem>>, %arg4: memref<4x32xf32, #tpu.memory_space<vmem>>, %arg5: memref<1x32xf32, #tpu.memory_space<vmem>>, %arg6: memref<32x32xf32, #tpu.memory_space<vmem>>, %arg7: memref<1x32xf32, #tpu.memory_space<vmem>>, %arg8: memref<2x8xf32, #tpu.memory_space<vmem>>) attributes {dimension_semantics = [#tpu.dimension_semantics<parallel>, #tpu.dimension_semantics<parallel>], iteration_bounds = array<i64: 1, 1>, scalar_prefetch = 0 : i64, scratch_operands = 0 : i64, tpu.core_type = #tpu.core_type<tc>, window_params = [{transform_indices = @transform_0, window_bounds = array<i64: 2, 8, 4>}, {transform_indices = @transform_1, window_bounds = array<i64: 2, 32>}, {pipeline_mode = #tpu.pipeline_mode<synchronous>, transform_indices = @transform_2, window_bounds = array<i64: 4, 32>}, {pipeline_mode = #tpu.pipeline_mode<synchronous>, transform_indices = @transform_3, window_bounds = array<i64: 1, 32>}, {pipeline_mode = #tpu.pipeline_mode<synchronous>, transform_indices = @transform_4, window_bounds = array<i64: 32, 32>}, {pipeline_mode = #tpu.pipeline_mode<synchronous>, transform_indices = @transform_5, window_bounds = array<i64: 1, 32>}, {transform_indices = @transform_6, window_bounds = array<i64: 2, 8>}]} {
    %c0 = arith.constant 0 : index
    %c0_0 = arith.constant 0 : index
    %c0_1 = arith.constant 0 : index
    %0 = vector.load %arg2[%c0, %c0_0, %c0_1] : memref<2x8x4xbf16, #tpu.memory_space<vmem>>, vector<2x8x4xbf16>
    %1 = arith.extf %0 : vector<2x8x4xbf16> to vector<2x8x4xf32>
    %2 = vector.shape_cast %1 : vector<2x8x4xf32> to vector<16x4xf32>
    %c0_2 = arith.constant 0 : index
    %c0_3 = arith.constant 0 : index
    %3 = vector.load %arg4[%c0_2, %c0_3] : memref<4x32xf32, #tpu.memory_space<vmem>>, vector<4x32xf32>
    %cst = arith.constant dense<0.000000e+00> : vector<16x32xf32>
    %4 = tpu.matmul %2, %3, %cst {dimension_numbers = #tpu.dot_dimension_numbers<[1], [0], [0], [1], [0, 0, 1, 1], [], []>} : vector<16x4xf32>, vector<4x32xf32>, vector<16x32xf32> -> vector<16x32xf32>
    %c0_4 = arith.constant 0 : index
    %c0_5 = arith.constant 0 : index
    %5 = vector.load %arg5[%c0_4, %c0_5] : memref<1x32xf32, #tpu.memory_space<vmem>>, vector<1x32xf32>
    %6 = vector.broadcast %5 : vector<1x32xf32> to vector<16x32xf32>
    %7 = arith.addf %4, %6 : vector<16x32xf32>
    %cst_6 = arith.constant 0.000000e+00 : f32
    %8 = vector.broadcast %cst_6 : f32 to vector<16x32xf32>
    %9 = arith.maximumf %7, %8 : vector<16x32xf32>
    %c0_7 = arith.constant 0 : index
    %c0_8 = arith.constant 0 : index
    %10 = vector.load %arg6[%c0_7, %c0_8] : memref<32x32xf32, #tpu.memory_space<vmem>>, vector<32x32xf32>
    %cst_9 = arith.constant dense<0.000000e+00> : vector<16x32xf32>
    %11 = tpu.matmul %9, %10, %cst_9 {dimension_numbers = #tpu.dot_dimension_numbers<[1], [0], [0], [1], [0, 0, 1, 1], [], []>} : vector<16x32xf32>, vector<32x32xf32>, vector<16x32xf32> -> vector<16x32xf32>
    %c0_10 = arith.constant 0 : index
    %c0_11 = arith.constant 0 : index
    %12 = vector.load %arg7[%c0_10, %c0_11] : memref<1x32xf32, #tpu.memory_space<vmem>>, vector<1x32xf32>
    %13 = vector.broadcast %12 : vector<1x32xf32> to vector<16x32xf32>
    %14 = arith.addf %11, %13 : vector<16x32xf32>
    %15 = vector.shape_cast %14 : vector<16x32xf32> to vector<2x8x32xf32>
    %c0_12 = arith.constant 0 : index
    %c0_13 = arith.constant 0 : index
    %16 = vector.load %arg3[%c0_12, %c0_13] : memref<2x32xf32, #tpu.memory_space<vmem>>, vector<2x32xf32>
    %17 = arith.mulf %16, %16 : vector<2x32xf32>
    %cst_14 = arith.constant dense<0.000000e+00> : vector<2xf32>
    %18 = vector.multi_reduction <add>, %17, %cst_14 [1] : vector<2x32xf32> to vector<2xf32>
    %19 = vector.shape_cast %18 : vector<2xf32> to vector<2x1xf32>
    %cst_15 = arith.constant 1.000000e-16 : f32
    %20 = vector.broadcast %cst_15 : f32 to vector<2x1xf32>
    %21 = arith.addf %19, %20 : vector<2x1xf32>
    %22 = math.rsqrt %21 : vector<2x1xf32>
    %23 = vector.shape_cast %16 : vector<2x32xf32> to vector<2x1x32xf32>
    %24 = vector.broadcast %23 : vector<2x1x32xf32> to vector<2x8x32xf32>
    %25 = arith.mulf %15, %24 : vector<2x8x32xf32>
    %cst_16 = arith.constant dense<0.000000e+00> : vector<2x8xf32>
    %26 = vector.multi_reduction <add>, %25, %cst_16 [2] : vector<2x8x32xf32> to vector<2x8xf32>
    %27 = arith.mulf %15, %15 : vector<2x8x32xf32>
    %cst_17 = arith.constant dense<0.000000e+00> : vector<2x8xf32>
    %28 = vector.multi_reduction <add>, %27, %cst_17 [2] : vector<2x8x32xf32> to vector<2x8xf32>
    %cst_18 = arith.constant 1.000000e-16 : f32
    %29 = vector.broadcast %cst_18 : f32 to vector<2x8xf32>
    %30 = arith.addf %28, %29 : vector<2x8xf32>
    %31 = math.rsqrt %30 : vector<2x8xf32>
    %32 = arith.mulf %26, %31 : vector<2x8xf32>
    %33 = vector.broadcast %22 : vector<2x1xf32> to vector<2x8xf32>
    %34 = arith.mulf %32, %33 : vector<2x8xf32>
    %cst_19 = arith.constant 1.000000e+00 : f32
    %35 = vector.broadcast %cst_19 : f32 to vector<2x8xf32>
    %36 = arith.subf %35, %34 : vector<2x8xf32>
    %cst_20 = arith.constant 0.000000e+00 : f32
    %37 = vector.broadcast %cst_20 : f32 to vector<2x8xf32>
    %38 = arith.maximumf %36, %37 : vector<2x8xf32>
    %cst_21 = arith.constant 1.000000e-07 : f32
    %39 = vector.broadcast %cst_21 : f32 to vector<2x8xf32>
    %40 = arith.addf %39, %38 : vector<2x8xf32>
    %41 = math.log %40 : vector<2x8xf32>
    %cst_22 = arith.constant 0.000000e+00 : f32
    %42 = vector.broadcast %cst_22 : f32 to vector<2x8xf32>
    %43 = arith.subf %42, %41 : vector<2x8xf32>
    %c0_23 = arith.constant 0 : index
    %c0_24 = arith.constant 0 : index
    %44 = vector.load %arg8[%c0_23, %c0_24] : memref<2x8xf32, #tpu.memory_space<vmem>>, vector<2x8xf32>
    tpu.vector_store %arg8[%c0_23, %c0_24], %43 {strides = array<i32>} : memref<2x8xf32, #tpu.memory_space<vmem>>, vector<2x8xf32>,
    return
  }
  func.func @transform_0(%arg0: i32, %arg1: i32) -> (i32, i32, i32) {
    %c0_i32 = arith.constant 0 : i32
    %c0_i32_0 = arith.constant 0 : i32
    return %arg0, %arg1, %c0_i32 : i32, i32, i32
  }
  func.func @transform_1(%arg0: i32, %arg1: i32) -> (i32, i32) {
    %c0_i32 = arith.constant 0 : i32
    %c0_i32_0 = arith.constant 0 : i32
    return %arg0, %c0_i32 : i32, i32
  }
  func.func @transform_2(%arg0: i32, %arg1: i32) -> (i32, i32) {
    %c0_i32 = arith.constant 0 : i32
    %c0_i32_0 = arith.constant 0 : i32
    %c0_i32_1 = arith.constant 0 : i32
    return %c0_i32, %c0_i32_0 : i32, i32
  }
  func.func @transform_3(%arg0: i32, %arg1: i32) -> (i32, i32) {
    %c0_i32 = arith.constant 0 : i32
    %c0_i32_0 = arith.constant 0 : i32
    %c0_i32_1 = arith.constant 0 : i32
    return %c0_i32, %c0_i32_0 : i32, i32
  }
  func.func @transform_4(%arg0: i32, %arg1: i32) -> (i32, i32) {
    %c0_i32 = arith.constant 0 : i32
    %c0_i32_0 = arith.constant 0 : i32
    %c0_i32_1 = arith.constant 0 : i32
    return %c0_i32, %c0_i32_0 : i32, i32
  }
  func.func @transform_5(%arg0: i32, %arg1: i32) -> (i32, i32) {
    %c0_i32 = arith.constant 0 : i32
    %c0_i32_0 = arith.constant 0 : i32
    %c0_i32_1 = arith.constant 0 : i32
    return %c0_i32, %c0_i32_0 : i32, i32
  }
  func.func @transform_6(%arg0: i32, %arg1: i32) -> (i32, i32) {
    %c0_i32 = arith.constant 0 : i32
    return %arg0, %arg1 : i32, i32
  }
}

</mosaic_0001>

<bundles_post_ra>
// kernel: tpu_custom_call.1
= control target key start
LH: loop header
LB: loop body
LE: loop exit
PB: predicated region body
PF: predicated region fallthrough
CT: control target
= control target key end

     0   :  { %11 = vsyncpa [#allocation3], 0  ;;  %s531_s0 = inlined_call_operand.vmem [shape: bf16[2,8,4], index: 0, kind: input, shape index: {}]   ;;  %s532_s1 = inlined_call_operand.vmem [shape: f32[2,32], index: 1, kind: input, shape index: {}]   ;;  %s533_s2 = inlined_call_operand.vmem [shape: f32[4,32], index: 2, kind: input, shape index: {}]   ;;  %s534_s3 = inlined_call_operand.vmem [shape: f32[1,32], index: 3, kind: input, shape index: {}]   ;;  %s535_s4 = inlined_call_operand.hbm [shape: f32[32,32], index: 4, kind: input, shape index: {}]   ;;  %s536_s5 = inlined_call_operand.vmem [shape: f32[1,32], index: 5, kind: input, shape index: {}]   ;;  %s537_s6 = inlined_call_operand.hbm [shape: f32[2,8], index: 6, kind: output, shape index: {}]  }
   0x1   :  { %12 = vsyncpa [#allocation4], 0  ;;  %s455_s21 = smov [#allocation2]  }
   0x2   :  { %s26_s22 = sshll.u32 %s455_s21, 4  ;;  %s27_s22 = int_to_ptr.vmem [resolvable:$true] %s26_s22 }
   0x3   :  { %s419_s23 = scalar_lea.vmem %s27_s22, 512  ;;  %p424_p1 = scmp.lt.s32.totalorder %s27_s22, %s27_s22 }
   0x4   :  { %p420_p0 = scmp.ne.s32.totalorder %s27_s22, %s419_s23  ;;  %p425_p2 = scmp.lt.s32.totalorder %s419_s23, %s419_s23 }
   0x6   :  { %p426_p3 = por %p425_p2, %p424_p1 }
   0x8   :  { %p427_p4 = pnand %p426_p3, %p420_p0 }
   0xa   :  { %430 = shalt.err (!%p427_p4)
}
   0xb   :  { %s456_s24 = smov 128   ;;  %s457_s25 = smov 8  }
   0xc   :  { %32 = dma.hbm_to_vmem [thread:$0]  %s535_s4, 512, %s27_s22, [#allocation3], %s456_s24, %s456_s24, %s457_s25  }
   0xd   :  { %451 = dma.done.wait [#allocation3], 512  }
   0xe   :  { %452 = vsyncadd [#allocation3], 4294966784  ;;  %vm57_vm0 = vcmask 1043456   ;;  %v42_v0 = vld [vmem:[%s533_s2] sm:$0xf]  ;;  %vm50_vm1 = vcmask 31744   ;;  %v243_v20 = vlaneseq }
   0xf   :  { %v365_v1 = vld [vmem:[%s531_s0] sm:$0xff]   ;;  %377 = vmatprep.subr.msk.mxu0 %vm57_vm0, %v42_v0  ;;  %v141_v4 = vld [vmem:[#allocation2 + $0x18] sm:$0xff]  ;;  %v140_v5 = vld [vmem:[#allocation2 + $0x10] sm:$0xff]  ;;  %vm149_vm2 = vcmask 261120   ;;  %vm233_vm3 = vcmask 254976   ;;  %v459_v44 = vmov 0  }
  0x10   :  { %v366_v2 = vunpack.c.l.bf16 %v365_v1  ;;  %v367_v3 = vunpack.c.h.bf16 %v365_v1  ;;  %378 = vmatpush3.msk.msra.mxu0 %vm57_vm0, %v42_v0  ;;  %382 = vmatprep.subr.mxu1 %v141_v4  ;;  %v139_v6 = vld [vmem:[#allocation2 + $0x8] sm:$0xff]  ;;  %v138_v7 = vld [vmem:[#allocation2] sm:$0xff]  ;;  %v458_v18 = vmov 1966171168   ;;  %v514_v22 = vshrl.u32 %v243_v20, 7 }
  0x11   :  { %383 = vmatpush3.msra.mxu1 %v141_v4  ;;  %v357_v8 = vld [vmem:[%s534_s3] ss:$0 sm:$0xff]  ;;  %v241_v19 = vunpack.c.l.s4 %v458_v18  ;;  %400 = vset.pattern.permute.xlu0 %v459_v44  ;;  %vm337_vm4 = vcmask 1041409   ;;  %vm340_vm5 = vcmask 58368  }
  0x12   :  { %379 = vmatprep.mubr.msk.f32.mxu0 %vm50_vm1, %v366_v2  ;;  %384 = vmatprep.subr.mxu1 %v140_v5  ;;  %v231_v15 = vld [vmem:[%s532_s1] sm:$0x3]  ;;  %v264_v28 = vsub.s32 0, %v514_v22  ;;  %v301_v51 = vsub.s32 1, %v514_v22  ;;  %s460_s1 = smov [#allocation5]  }
  0x13   :  { %380 = vmatmul.mubr.msk.f32.vlgmr.msra.gmra.mxu0 %vm50_vm1, %v367_v3  ;;  %385 = vmatpush3.msra.mxu1 %v140_v5  ;;  %v232_v16 = vmul.f32 %v231_v15, %v231_v15  ;;  %v242_v21 = vunpack.c.0.s8 %v241_v19  ;;  %v361_v27 = vld [vmem:[%s536_s5] ss:$0 sm:$0xff]  ;;  %s348_s5 = sshll.u32 %s460_s1, 4  ;;  %s349_s5 = int_to_ptr.vmem [resolvable:$true] %s348_s5 }
  0x14   :  { %386 = vmatprep.subr.mxu1 %v139_v6  ;;  %399 = vset.pattern.permute.xlu1 %v459_v44  ;;  %s431_s10 = scalar_lea.vmem %s349_s5, 32  ;;  %p436_p6 = scmp.lt.s32.totalorder %s349_s5, %s349_s5 }
  0x15   :  { %387 = vmatpush3.msra.mxu1 %v139_v6  ;;  %v234_v17 = vsel %vm233_vm3, %v232_v16, 0.0  ;;  %v245_v23 = vsub.s32 %v242_v21, %v514_v22  ;;  %p432_p5 = scmp.ne.s32.totalorder %s349_s5, %s431_s10  ;;  %p437_p7 = scmp.lt.s32.totalorder %s431_s10, %s431_s10 }
  0x16   :  { %388 = vmatprep.subr.mxu1 %v138_v7  ;;  %235 = vadd.xlane.f32.xlu0 %v234_v17 }
  0x17   :  { %389 = vmatpush3.msra.mxu1 %v138_v7  ;;  %v246_v24 = vrot.slane %v231_v15, %v245_v23  ;;  %p438_p8 = por %p437_p7, %p436_p6 }
  0x19   :  { %v247_v25 = vcombine.high %v246_v24, %v246_v24  ;;  %v254_v26 = vrot.slane %v246_v24, %v245_v23  ;;  %p439_p9 = pnand %p438_p8, %p432_p5 }
  0x1b   :  { %v261_v29 = vrot.slane %v247_v25, %v245_v23  ;;  %v265_v32 = vrot.slane %v254_v26, %v264_v28 }
  0x1d   :  { %v269_v36 = vrot.slane %v261_v29, %v264_v28 }
  0x9f   :  { %v236_v45 = vpop.xlane.xlu0 %235 }
  0xa0   :  { %v237_v46 = vadd.f32 1e-16, %v236_v45 }
  0xa2   :  { %401 = vrsqrt.f32 %v237_v46 }
  0xaf   :  { %v402_v52 = vpop.eup %401 }
  0xb0   :  { %v302_v55 = vrot.slane %v402_v52, %v301_v51  ;;  %v298_v59 = vrot.slane %v402_v52, %v264_v28 }
  0xd3   :  { %v381_v9 = vpop.f32.mrf.mxu0 }
  0xd4   :  { %v133_v10 = vadd.f32 %v381_v9, %v357_v8 }
  0xd5   :  { %v127_v11 = vpop.f32.mrf.mxu0 }
  0xd6   :  { %v128_v12 = vadd.f32 %v357_v8, %v127_v11  ;;  %v137_v14 = vmax.f32 %v133_v10, 0.0  ;;  %v328_v11 = vand.u32 127, %v243_v20 }
  0xd8   :  { %v136_v13 = vmax.f32 %v128_v12, 0.0  ;;  %v331_v12 = vsub.s32 %v328_v11, %v514_v22 }
  0xda   :  { %390 = vmatprep.mubr.msk.f32.mxu1 %vm149_vm2, %v136_v13 }
  0xdb   :  { %391 = vmatmul.mubr.msk.f32.vlgmr.msra.gmra.mxu1 %vm149_vm2, %v137_v14 }
 0x19b   :  { %v392_v30 = vpop.f32.mrf.mxu1 }
 0x19c   :  { %v228_v31 = vadd.f32 %v392_v30, %v361_v27 }
 0x19d   :  { %v222_v33 = vpop.f32.mrf.mxu1 }
 0x19e   :  { %v223_v34 = vadd.f32 %v361_v27, %v222_v33  ;;  %v281_v35 = vmul.f32 %v228_v31, %v228_v31  ;;  %v273_v41 = vmul.f32 %v269_v36, %v228_v31 }
 0x1a0   :  { %v285_v37 = vsel %vm149_vm2, %v281_v35, 0.0  ;;  %v280_v38 = vmul.f32 %v223_v34, %v223_v34  ;;  %v272_v39 = vmul.f32 %v265_v32, %v223_v34  ;;  %v277_v43 = vsel %vm149_vm2, %v273_v41, 0.0 }
 0x1a1   :  { %286 = vadd.xlane.f32.xlu1 %v285_v37 }
 0x1a2   :  { %v282_v40 = vsel %vm149_vm2, %v280_v38, 0.0  ;;  %v274_v42 = vsel %vm149_vm2, %v272_v39, 0.0 }
 0x1a3   :  { %283 = vadd.xlane.f32.xlu0 %v282_v40 }
 0x1a5   :  { %275 = vadd.xlane.f32.xlu1 %v274_v42 }
 0x1a7   :  { %278 = vadd.xlane.f32.xlu0 %v277_v43 }
 0x22a   :  { %v287_v47 = vpop.xlane.xlu1 %286 }
 0x22b   :  { %v289_v48 = vadd.f32 1e-16, %v287_v47 }
 0x22c   :  { %v284_v49 = vpop.xlane.xlu0 %283 }
 0x22d   :  { %403 = vrsqrt.f32 %v289_v48  ;;  %v288_v50 = vadd.f32 1e-16, %v284_v49 }
 0x22e   :  { %v276_v58 = vpop.xlane.xlu1 %275 }
 0x22f   :  { %405 = vrsqrt.f32 %v288_v50 }
 0x230   :  { %v279_v54 = vpop.xlane.xlu0 %278 }
 0x23a   :  { %v404_v53 = vpop.eup %403 }
 0x23b   :  { %v293_v56 = vmul.f32 %v404_v53, %v279_v54 }
 0x23c   :  { %v406_v57 = vpop.eup %405 }
 0x23d   :  { %v292_v60 = vmul.f32 %v406_v57, %v276_v58  ;;  %v306_v61 = vmul.f32 %v302_v55, %v293_v56 }
 0x23f   :  { %v305_v62 = vmul.f32 %v298_v59, %v292_v60  ;;  %v308_v63 = vsub.f32 1.0, %v306_v61 }
 0x241   :  { %v307_v0 = vsub.f32 1.0, %v305_v62  ;;  %v310_v1 = vmax.f32 %v308_v63, 0.0 }
 0x243   :  { %v309_v2 = vmax.f32 %v307_v0, 0.0  ;;  %v312_v3 = vadd.f32 1e-07, %v310_v1 }
 0x245   :  { %v311_v4 = vadd.f32 1e-07, %v309_v2  ;;  %407 = vlog2.f32 %v312_v3 }
 0x247   :  { %409 = vlog2.f32 %v311_v4 }
 0x252   :  { %v408_v5 = vpop.eup %407 }
 0x253   :  { %v316_v6 = vmul.f32 0.6931472, %v408_v5 }
 0x254   :  { %v410_v7 = vpop.eup %409 }
 0x255   :  { %v318_v8 = vsub.f32 0.0, %v316_v6  ;;  %v314_v9 = vmul.f32 0.6931472, %v410_v7 }
 0x257   :  { %325 = vperm.xlu0 %400, %v318_v8   ;;  %v317_v10 = vsub.f32 0.0, %v314_v9 }
 0x259   :  { %322 = vperm.xlu1 %399, %v317_v10  }
 0x2d2   :  { %v326_v13 = vpop.permute.xlu0 %325 }
 0x2d3   :  { %v336_v15 = vrot.slane %v326_v13, %v331_v12 }
 0x2d4   :  { %v323_v14 = vpop.permute.xlu1 %322 }
 0x2d5   :  { %v332_v16 = vrot.slane %v323_v14, %v331_v12 }
 0x2d7   :  { %v338_v17 = vsel %vm337_vm4, %v336_v15, %v332_v16 }
 0x2d8   :  { %341 = vst.msk [vmem:[#allocation5] sm:$0x3] %vm340_vm5, %v338_v17 }
 0x2d9   :  { %442 = shalt.err (!%p439_p9)
}
 0x2da   :  { %351 = dma.vmem_to_hbm [thread:$0]  %s349_s5, 32, %s537_s6, [#allocation4]  }
 0x2db   :  { %453 = dma.done.wait [#allocation4], 32  }
 0x2dc   :  { %454 = vsyncadd [#allocation4], 4294967264 }
 0x2dd   :  { %355 = vsyncpa [#allocation3], 1 }
 0x2de   :  { %356 = vsyncpa [#allocation4], 1 }

</bundles_post_ra>
